<compile_context>
chip_gen: v7x
topology: tpu7x:2x2x1
jax: 0.10.0
libtpu: 0.0.40
codegen_flags: <defaults>
</compile_context>

<pallas_src>
import functools

import jax
import jax.numpy as jnp
import numpy as np
from jax.experimental import pallas as pl
from jax.experimental.pallas import tpu as pltpu

LANE = 128          # lane width: last-dim tiling granularity
ROW_ALIGN = 16      # bf16 sublane packing granularity
MIB = 1 << 20


def _round_up(x, m):
    return (x + m - 1) // m * m


# ---------------------------------------------------------------------------
# Pallas kernel: fc1+tanh and fc2+tanh computed once per row tile (j == 0),
# h2 staged in a bf16 VMEM scratch; fc3+tanh computed per (row, vocab) tile.
# ---------------------------------------------------------------------------
def mlp3_tanh_kernel(x_ref, w1_ref, b1_ref, w2_ref, b2_ref, w3_ref, b3_ref,
                     o_ref, h2_ref, *, tn, w3_resident):
    j = pl.program_id(1)

    @pl.when(j == 0)
    def _():
        # bf16 MXU inputs, f32 accumulate + bias-add + tanh (VPU/EUP in f32).
        h1 = jnp.tanh(
            jnp.dot(x_ref[...], w1_ref[...],
                    preferred_element_type=jnp.float32) + b1_ref[...])
        h2 = jnp.tanh(
            jnp.dot(h1.astype(jnp.bfloat16), w2_ref[...],
                    preferred_element_type=jnp.float32) + b2_ref[...])
        h2_ref[...] = h2.astype(jnp.bfloat16)

    if w3_resident:
        # w3/b3 live fully in VMEM; slice the current lane-dense column tile.
        col = pl.multiple_of(j * tn, tn)
        w3 = w3_ref[:, pl.ds(col, tn)]
        b3 = b3_ref[:, pl.ds(col, tn)]
    else:
        w3 = w3_ref[...]
        b3 = b3_ref[...]

    o_ref[...] = jnp.tanh(
        jnp.dot(h2_ref[...], w3, preferred_element_type=jnp.float32)
        + b3).astype(o_ref.dtype)


def mlp3_tanh(x2d, w1, b1, w2, b2, w3, b3, *,
              tm_max=1024, tn_max=1024, out_dtype=jnp.bfloat16,
              out_buffer_count=2, w3_resident_budget_bytes=8 * MIB):
    """x2d: (N, H); w*: (in, out); b*: (1, out). Returns (N, V) in out_dtype."""
    n, h = x2d.shape
    v = w3.shape[1]

    # --- padded / tiled geometry -------------------------------------------
    h_pad = _round_up(h, LANE)                       # lane-dense contraction dim
    # Row tile: cap at tm_max, multiple of the bf16 sublane granularity, and
    # guarantee >= 2 row tiles so the "parallel" axis feeds both v7x cores.
    tm = min(tm_max, max(ROW_ALIGN, _round_up(-(-n // 2), ROW_ALIGN)))
    n_pad = max(_round_up(n, tm), 2 * tm)
    # Column tile: lane-dense, never an untiled-vocab fallback; pad V to it.
    tn = min(tn_max, _round_up(v, LANE))
    v_pad = _round_up(v, tn)
    grid = (n_pad // tm, v_pad // tn)

    # --- zero-pad operands (mathematically a no-op: zero rows/cols add 0) ---
    x2d = jnp.pad(x2d.astype(jnp.bfloat16), ((0, n_pad - n), (0, h_pad - h)))
    w1p = jnp.pad(w1, ((0, h_pad - h), (0, h_pad - h))).astype(jnp.bfloat16)
    w2p = jnp.pad(w2, ((0, h_pad - h), (0, h_pad - h))).astype(jnp.bfloat16)
    w3p = jnp.pad(w3, ((0, h_pad - h), (0, v_pad - v))).astype(jnp.bfloat16)
    b1p = jnp.pad(b1.astype(jnp.float32), ((0, 0), (0, h_pad - h)))
    b2p = jnp.pad(b2.astype(jnp.float32), ((0, 0), (0, h_pad - h)))
    b3p = jnp.pad(b3.astype(jnp.float32), ((0, 0), (0, v_pad - v)))

    out_bytes = jnp.dtype(out_dtype).itemsize
    # Keep w3 fully VMEM-resident when its padded bf16 slab is small: avoids
    # re-streaming H*V*2 bytes once per row tile.
    w3_resident = (h_pad * v_pad * 2) <= w3_resident_budget_bytes

    if w3_resident:
        w3_spec = pl.BlockSpec((h_pad, v_pad), lambda i, j: (0, 0))
        b3_spec = pl.BlockSpec((1, v_pad), lambda i, j: (0, 0))
    else:
        w3_spec = pl.BlockSpec((h_pad, tn), lambda i, j: (0, j))
        b3_spec = pl.BlockSpec((1, tn), lambda i, j: (0, j))

    out_spec_kwargs = {}
    if out_buffer_count != 2:
        # v5e sweep hook: a 3rd out buffer can hide exposed writeback latency.
        out_spec_kwargs["pipeline_mode"] = pl.Buffered(out_buffer_count)
    out_spec = pl.BlockSpec((tm, tn), lambda i, j: (i, j), **out_spec_kwargs)

    # --- explicit VMEM budget (double buffers on pipelined operands) --------
    vmem_needed = (
        2 * tm * h_pad * 2                       # x tiles (bf16)
        + 2 * 2 * h_pad * h_pad * 2              # w1, w2 (bf16)
        + 2 * 2 * 8 * h_pad * 4                  # b1, b2 (f32, sublane-padded)
        + (2 * h_pad * v_pad * 2 if w3_resident else 2 * h_pad * tn * 2)
        + (2 * 8 * v_pad * 4 if w3_resident else 2 * 8 * tn * 4)
        + max(out_buffer_count, 2) * tm * tn * out_bytes   # out tiles
        + tm * h_pad * 2                         # h2 scratch (bf16)
    )
    vmem_limit = min(max(32 * MIB, int(vmem_needed * 1.25) + 4 * MIB), 128 * MIB)

    # --- advisory cost estimate (actual kernel traffic) ----------------------
    n_row_tiles = n_pad // tm
    w3_streams = 1 if w3_resident else n_row_tiles
    flops = 2 * n_pad * (2 * h_pad * h_pad + h_pad * v_pad)
    transcendentals = n_pad * (2 * h_pad + v_pad)
    bytes_accessed = (
        n_pad * h_pad * 2                        # x in (bf16)
        + 2 * h_pad * h_pad * 2                  # w1, w2 (bf16, fetched once)
        + 2 * h_pad * 4                          # b1, b2 (f32)
        + w3_streams * h_pad * v_pad * 2         # w3 (re-streamed if not resident)
        + w3_streams * v_pad * 4                 # b3
        + n_pad * v_pad * out_bytes)             # out writeback

    kernel = functools.partial(mlp3_tanh_kernel, tn=tn, w3_resident=w3_resident)

    out = pl.pallas_call(
        kernel,
        out_shape=jax.ShapeDtypeStruct((n_pad, v_pad), out_dtype),
        grid_spec=pltpu.PrefetchScalarGridSpec(
            num_scalar_prefetch=0,
            grid=grid,
            in_specs=[
                pl.BlockSpec((tm, h_pad), lambda i, j: (i, 0)),   # x row tile
                pl.BlockSpec((h_pad, h_pad), lambda i, j: (0, 0)),  # w1 (resident)
                pl.BlockSpec((1, h_pad), lambda i, j: (0, 0)),      # b1 (resident)
                pl.BlockSpec((h_pad, h_pad), lambda i, j: (0, 0)),  # w2 (resident)
                pl.BlockSpec((1, h_pad), lambda i, j: (0, 0)),      # b2 (resident)
                w3_spec,                                            # w3
                b3_spec,                                            # b3
            ],
            out_specs=out_spec,
            scratch_shapes=[pltpu.VMEM((tm, h_pad), jnp.bfloat16)],  # staged h2
        ),
        compiler_params=pltpu.CompilerParams(
            dimension_semantics=("parallel", "arbitrary"),
            vmem_limit_bytes=vmem_limit),
        cost_estimate=pl.CostEstimate(
            flops=flops, transcendentals=transcendentals,
            bytes_accessed=bytes_accessed),
    )(x2d, w1p, b1p, w2p, b2p, w3p, b3p)
    return out[:n, :v]


# ---------------------------------------------------------------------------
# Glue: BERT-style embedding (token lookup + sinusoidal positional encoding).
# Dropout is identity (eval mode).
# ---------------------------------------------------------------------------
def sinusoidal_pos_encoding(seq_len, d_model):
    pos = np.arange(seq_len, dtype=np.float32)[:, None]
    i = np.arange(d_model, dtype=np.float32)[None, :]
    angle = pos / np.power(10000.0, (2.0 * np.floor(i / 2.0)) / d_model)
    pe = np.where(np.arange(d_model)[None, :] % 2 == 0,
                  np.sin(angle), np.cos(angle))
    return jnp.asarray(pe, dtype=jnp.float32)               # (S, H)


def bert_embedding(token_ids, token_emb_table):
    # token_ids: (B, S) int32 ; token_emb_table: (V, H)
    tok = jnp.take(token_emb_table, token_ids, axis=0)       # (B, S, H)
    pe = sinusoidal_pos_encoding(token_ids.shape[1], token_emb_table.shape[1])
    return tok + pe[None, :, :]


# ---------------------------------------------------------------------------
# Full model wrapper (mirrors SimpleModel.forward).
# ---------------------------------------------------------------------------
def init_params(key, hidden, vocab_size):
    ks = jax.random.split(key, 4)
    # PyTorch nn.Linear stores weight as (out, in); we keep (in, out) directly.
    def lin(k, fan_in, fan_out):
        bound = 1.0 / np.sqrt(fan_in)
        kw, kb = jax.random.split(k)
        w = jax.random.uniform(kw, (fan_in, fan_out), jnp.float32, -bound, bound)
        b = jax.random.uniform(kb, (1, fan_out), jnp.float32, -bound, bound)
        return w, b

    params = {}
    params["emb"] = jax.random.normal(ks[0], (vocab_size, hidden), jnp.float32)
    params["w1"], params["b1"] = lin(ks[1], hidden, hidden)
    params["w2"], params["b2"] = lin(ks[2], hidden, hidden)
    params["w3"], params["b3"] = lin(ks[3], hidden, vocab_size)
    return params


@jax.jit
def simple_model_forward(params, token_ids):
    b, s = token_ids.shape
    h = params["w1"].shape[0]
    # Gather + positional add in f32 (matches .float()), emitted as bf16 so the
    # kernel-side x DMA is halved (the bf16 cast would happen anyway for MXU).
    emb = bert_embedding(token_ids, params["emb"])            # (B, S, H) f32
    x2d = emb.reshape(b * s, h).astype(jnp.bfloat16)
    out2d = mlp3_tanh(x2d, params["w1"], params["b1"],
                      params["w2"], params["b2"],
                      params["w3"], params["b3"],
                      out_dtype=jnp.bfloat16)                 # (B*S, V) bf16
    return out2d.reshape(b, s, -1)


def reference_forward(params, token_ids):
    # Mirrors the kernel numerics: bf16 MXU inputs, f32 accumulate/bias/tanh,
    # bf16 result.
    bf = jnp.bfloat16
    emb = bert_embedding(token_ids, params["emb"]).astype(bf)
    h1 = jnp.tanh(jnp.dot(emb, params["w1"].astype(bf),
                          preferred_element_type=jnp.float32) + params["b1"][0])
    h2 = jnp.tanh(jnp.dot(h1.astype(bf), params["w2"].astype(bf),
                          preferred_element_type=jnp.float32) + params["b2"][0])
    out = jnp.tanh(jnp.dot(h2.astype(bf), params["w3"].astype(bf),
                           preferred_element_type=jnp.float32) + params["b3"][0])
    return out.astype(bf)


if __name__ == "__main__":
    # Small shapes consistent with the module: batch=2, seq=8, hidden=32, vocab=128.
    B, S, HIDDEN, VOCAB = 2, 8, 32, 128
    key = jax.random.PRNGKey(0)
    kp, kx = jax.random.split(key)

    params = init_params(kp, HIDDEN, VOCAB)
    token_ids = jax.random.randint(kx, (B, S), 0, VOCAB, dtype=jnp.int32)

    out = simple_model_forward(params, token_ids)
    out = jax.block_until_ready(out)

    ref = reference_forward(params, token_ids)
    assert out.shape == (B, S, VOCAB), out.shape
    assert jnp.allclose(out.astype(jnp.float32), ref.astype(jnp.float32),
                        atol=2e-2, rtol=2e-2), "mismatch vs reference"

    print("KERNEL_OK")
</pallas_src>

<mosaic_0001>
module attributes {stable_mosaic.version = 11 : i64} {
  func.func @mlp3_tanh_kernel(%arg0: i32, %arg1: i32, %arg2: memref<16x128xbf16, #tpu.memory_space<vmem>>, %arg3: memref<128x128xbf16, #tpu.memory_space<vmem>>, %arg4: memref<1x128xf32, #tpu.memory_space<vmem>>, %arg5: memref<128x128xbf16, #tpu.memory_space<vmem>>, %arg6: memref<1x128xf32, #tpu.memory_space<vmem>>, %arg7: memref<128x128xbf16, #tpu.memory_space<vmem>>, %arg8: memref<1x128xf32, #tpu.memory_space<vmem>>, %arg9: memref<16x128xbf16, #tpu.memory_space<vmem>>, %arg10: memref<16x128xbf16, #tpu.memory_space<vmem>>) attributes {dimension_semantics = [#tpu.dimension_semantics<parallel>, #tpu.dimension_semantics<arbitrary>], iteration_bounds = array<i64: 2, 1>, scalar_prefetch = 0 : i64, scratch_operands = 1 : i64, tpu.core_type = #tpu.core_type<tc>, window_params = [{transform_indices = @transform_0, window_bounds = array<i64: 16, 128>}, {pipeline_mode = #tpu.pipeline_mode<synchronous>, transform_indices = @transform_1, window_bounds = array<i64: 128, 128>}, {pipeline_mode = #tpu.pipeline_mode<synchronous>, transform_indices = @transform_2, window_bounds = array<i64: 1, 128>}, {pipeline_mode = #tpu.pipeline_mode<synchronous>, transform_indices = @transform_3, window_bounds = array<i64: 128, 128>}, {pipeline_mode = #tpu.pipeline_mode<synchronous>, transform_indices = @transform_4, window_bounds = array<i64: 1, 128>}, {pipeline_mode = #tpu.pipeline_mode<synchronous>, transform_indices = @transform_5, window_bounds = array<i64: 128, 128>}, {pipeline_mode = #tpu.pipeline_mode<synchronous>, transform_indices = @transform_6, window_bounds = array<i64: 1, 128>}, {transform_indices = @transform_7, window_bounds = array<i64: 16, 128>}]} {
    %c0_i32 = arith.constant 0 : i32
    %0 = arith.cmpi eq, %arg1, %c0_i32 : i32
    %1 = arith.extui %0 : i1 to i32
    %c0_i32_0 = arith.constant 0 : i32
    %2 = arith.cmpi ne, %1, %c0_i32_0 : i32
    scf.if %2 {
      %c0_6 = arith.constant 0 : index
      %c0_7 = arith.constant 0 : index
      %16 = vector.load %arg2[%c0_6, %c0_7] : memref<16x128xbf16, #tpu.memory_space<vmem>>, vector<16x128xbf16>
      %c0_8 = arith.constant 0 : index
      %c0_9 = arith.constant 0 : index
      %17 = vector.load %arg3[%c0_8, %c0_9] : memref<128x128xbf16, #tpu.memory_space<vmem>>, vector<128x128xbf16>
      %cst_10 = arith.constant dense<0.000000e+00> : vector<16x128xf32>
      %18 = tpu.matmul %16, %17, %cst_10 {dimension_numbers = #tpu.dot_dimension_numbers<[1], [0], [0], [1], [0, 0, 1, 1], [], []>} : vector<16x128xbf16>, vector<128x128xbf16>, vector<16x128xf32> -> vector<16x128xf32>
      %c0_11 = arith.constant 0 : index
      %c0_12 = arith.constant 0 : index
      %19 = vector.load %arg4[%c0_11, %c0_12] : memref<1x128xf32, #tpu.memory_space<vmem>>, vector<1x128xf32>
      %20 = vector.broadcast %19 : vector<1x128xf32> to vector<16x128xf32>
      %21 = arith.addf %18, %20 : vector<16x128xf32>
      %22 = math.tanh %21 : vector<16x128xf32>
      %23 = arith.truncf %22 : vector<16x128xf32> to vector<16x128xbf16>
      %c0_13 = arith.constant 0 : index
      %c0_14 = arith.constant 0 : index
      %24 = vector.load %arg5[%c0_13, %c0_14] : memref<128x128xbf16, #tpu.memory_space<vmem>>, vector<128x128xbf16>
      %cst_15 = arith.constant dense<0.000000e+00> : vector<16x128xf32>
      %25 = tpu.matmul %23, %24, %cst_15 {dimension_numbers = #tpu.dot_dimension_numbers<[1], [0], [0], [1], [0, 0, 1, 1], [], []>} : vector<16x128xbf16>, vector<128x128xbf16>, vector<16x128xf32> -> vector<16x128xf32>
      %c0_16 = arith.constant 0 : index
      %c0_17 = arith.constant 0 : index
      %26 = vector.load %arg6[%c0_16, %c0_17] : memref<1x128xf32, #tpu.memory_space<vmem>>, vector<1x128xf32>
      %27 = vector.broadcast %26 : vector<1x128xf32> to vector<16x128xf32>
      %28 = arith.addf %25, %27 : vector<16x128xf32>
      %29 = math.tanh %28 : vector<16x128xf32>
      %30 = arith.truncf %29 : vector<16x128xf32> to vector<16x128xbf16>
      %c0_18 = arith.constant 0 : index
      %c0_19 = arith.constant 0 : index
      %31 = vector.load %arg10[%c0_18, %c0_19] : memref<16x128xbf16, #tpu.memory_space<vmem>>, vector<16x128xbf16>
      tpu.vector_store %arg10[%c0_18, %c0_19], %30 {strides = array<i32>} : memref<16x128xbf16, #tpu.memory_space<vmem>>, vector<16x128xbf16>,
    } else {
    }
    %c128_i32 = arith.constant 128 : i32
    %3 = arith.muli %arg1, %c128_i32 : i32
    %4 = tpu.assume_multiple %3, 128 : i32
    %c0 = arith.constant 0 : index
    %5 = arith.index_cast %4 : i32 to index
    %6 = vector.load %arg7[%c0, %5] : memref<128x128xbf16, #tpu.memory_space<vmem>>, vector<128x128xbf16>
    %c0_1 = arith.constant 0 : index
    %7 = arith.index_cast %4 : i32 to index
    %8 = vector.load %arg8[%c0_1, %7] : memref<1x128xf32, #tpu.memory_space<vmem>>, vector<1x128xf32>
    %c0_2 = arith.constant 0 : index
    %c0_3 = arith.constant 0 : index
    %9 = vector.load %arg10[%c0_2, %c0_3] : memref<16x128xbf16, #tpu.memory_space<vmem>>, vector<16x128xbf16>
    %cst = arith.constant dense<0.000000e+00> : vector<16x128xf32>
    %10 = tpu.matmul %9, %6, %cst {dimension_numbers = #tpu.dot_dimension_numbers<[1], [0], [0], [1], [0, 0, 1, 1], [], []>} : vector<16x128xbf16>, vector<128x128xbf16>, vector<16x128xf32> -> vector<16x128xf32>
    %11 = vector.broadcast %8 : vector<1x128xf32> to vector<16x128xf32>
    %12 = arith.addf %10, %11 : vector<16x128xf32>
    %13 = math.tanh %12 : vector<16x128xf32>
    %14 = arith.truncf %13 : vector<16x128xf32> to vector<16x128xbf16>
    %c0_4 = arith.constant 0 : index
    %c0_5 = arith.constant 0 : index
    %15 = vector.load %arg9[%c0_4, %c0_5] : memref<16x128xbf16, #tpu.memory_space<vmem>>, vector<16x128xbf16>
    tpu.vector_store %arg9[%c0_4, %c0_5], %14 {strides = array<i32>} : memref<16x128xbf16, #tpu.memory_space<vmem>>, vector<16x128xbf16>,
    return
  }
  func.func @transform_0(%arg0: i32, %arg1: i32) -> (i32, i32) {
    %c0_i32 = arith.constant 0 : i32
    %c0_i32_0 = arith.constant 0 : i32
    return %arg0, %c0_i32 : i32, i32
  }
  func.func @transform_1(%arg0: i32, %arg1: i32) -> (i32, i32) {
    %c0_i32 = arith.constant 0 : i32
    %c0_i32_0 = arith.constant 0 : i32
    %c0_i32_1 = arith.constant 0 : i32
    return %c0_i32, %c0_i32_0 : i32, i32
  }
  func.func @transform_2(%arg0: i32, %arg1: i32) -> (i32, i32) {
    %c0_i32 = arith.constant 0 : i32
    %c0_i32_0 = arith.constant 0 : i32
    %c0_i32_1 = arith.constant 0 : i32
    return %c0_i32, %c0_i32_0 : i32, i32
  }
  func.func @transform_3(%arg0: i32, %arg1: i32) -> (i32, i32) {
    %c0_i32 = arith.constant 0 : i32
    %c0_i32_0 = arith.constant 0 : i32
    %c0_i32_1 = arith.constant 0 : i32
    return %c0_i32, %c0_i32_0 : i32, i32
  }
  func.func @transform_4(%arg0: i32, %arg1: i32) -> (i32, i32) {
    %c0_i32 = arith.constant 0 : i32
    %c0_i32_0 = arith.constant 0 : i32
    %c0_i32_1 = arith.constant 0 : i32
    return %c0_i32, %c0_i32_0 : i32, i32
  }
  func.func @transform_5(%arg0: i32, %arg1: i32) -> (i32, i32) {
    %c0_i32 = arith.constant 0 : i32
    %c0_i32_0 = arith.constant 0 : i32
    %c0_i32_1 = arith.constant 0 : i32
    return %c0_i32, %c0_i32_0 : i32, i32
  }
  func.func @transform_6(%arg0: i32, %arg1: i32) -> (i32, i32) {
    %c0_i32 = arith.constant 0 : i32
    %c0_i32_0 = arith.constant 0 : i32
    %c0_i32_1 = arith.constant 0 : i32
    return %c0_i32, %c0_i32_0 : i32, i32
  }
  func.func @transform_7(%arg0: i32, %arg1: i32) -> (i32, i32) {
    %c0_i32 = arith.constant 0 : i32
    return %arg0, %arg1 : i32, i32
  }
}

</mosaic_0001>

<bundles_post_ra>
// kernel: simple_model_forward.1
= control target key start
LH: loop header
LB: loop body
LE: loop exit
PB: predicated region body
PF: predicated region fallthrough
CT: control target
= control target key end

     0   :  { %s1019_s24 = smov 0   ;;  %s1021_s25 = smov 0   ;;  %s1170_s0 = inlined_call_operand.vmem [shape: bf16[32,128], index: 0, kind: input, shape index: {}]   ;;  %s1171_s1 = inlined_call_operand.vmem [shape: bf16[128,128], index: 1, kind: input, shape index: {}]   ;;  %s1172_s2 = inlined_call_operand.vmem [shape: f32[1,128], index: 2, kind: input, shape index: {}]   ;;  %s1173_s3 = inlined_call_operand.vmem [shape: bf16[128,128], index: 3, kind: input, shape index: {}]   ;;  %s1174_s4 = inlined_call_operand.vmem [shape: f32[1,128], index: 4, kind: input, shape index: {}]   ;;  %s1175_s5 = inlined_call_operand.vmem [shape: bf16[128,128], index: 5, kind: input, shape index: {}]   ;;  %s1176_s6 = inlined_call_operand.vmem [shape: f32[1,128], index: 6, kind: input, shape index: {}]   ;;  %s1177_s7 = inlined_call_operand.vmem [shape: bf16[32,128], index: 7, kind: output, shape index: {}]  }
   0x1   :  { %s1023_s26 = smov 0  }
   0x2 LB: > { %s29_s27 = sadd.s32 1, %s971_s25  ;;  %p759_p0 = scmp.ge.s32.totalorder %s975_s26, 1  ;;  %s975_s26 = sphi %s1023_s26, %s17_s26   ;;  %s971_s25 = sphi %s1021_s25, %s1179_s25   ;;  %s967_s24 = sphi %s1019_s24, %s1178_s24  }
   0x3   : > { %p31_p1 = scmp.ge.s32.totalorder %s29_s27, 2  ;;  %p252_p2 = scmp.lt.s32.totalorder %s975_s26, 3 }
   0x5   : > { %s1181_s27 = smov (%p31_p1, %s29_s27), 0  ;;  %p253_p3 = pnand %p759_p0, %p252_p2 }
   0x6   : > { %v916_v0 = vld [vmem:[%s1171_s1] sm:$0xff] (!%p253_p3)   ;;  %v977_v1 = vmov (!%p253_p3), 0.0   ;;  %v917_v2 = vld [vmem:[%s1171_s1 + $0x8] sm:$0xff] (!%p253_p3)   ;;  %vm978_vm0 = vmmov (!%p253_p3), 0   ;;  %s760_s9 = sshll.u32 (!%p253_p3), %s967_s24, 1  ;;  %v918_v3 = vld [vmem:[%s1171_s1 + $0x10] sm:$0xff] (!%p253_p3)  }
   0x7   : > { %256 = sbr.rel (%p253_p3) target bundleno = 727 (0x2d7), region = 48  ;;  %830 = vmatprep.subr.bf16.mxu0 (!%p253_p3), %v977_v1  ;;  %850 = vmatprep.subr.bf16.mxu1 (!%p253_p3), %v977_v1  ;;  %p288_p4 = scmp.lt.s32.totalorder (!%p253_p3), %s760_s9, 3  ;;  %v925_v4 = vld [vmem:[%s1173_s3] sm:$0xff] (!%p253_p3)   ;;  %v919_v5 = vld [vmem:[%s1171_s1 + $0x18] sm:$0xff] (!%p253_p3)   ;;  %v926_v6 = vld [vmem:[%s1173_s3 + $0x8] sm:$0xff] (!%p253_p3)  }
   0x8   : > { %831 = vmatpush3.bf16.msra.mxu0 (!%p253_p3), %v916_v0  ;;  %846 = vmatprep.mubr.msk.bf16.mxu0 (!%p253_p3), %vm978_vm0, %v977_v1  ;;  %v920_v7 = vld [vmem:[%s1171_s1 + $0x20] sm:$0xff] (!%p253_p3)   ;;  %v927_v8 = vld [vmem:[%s1173_s3 + $0x10] sm:$0xff] (!%p253_p3)   ;;  %v921_v9 = vld [vmem:[%s1171_s1 + $0x28] sm:$0xff] (!%p253_p3)  }
   0x9   : > { %832 = vmatprep.subr.bf16.mxu0 (!%p253_p3), %v977_v1  ;;  %866 = vmatprep.mubr.msk.bf16.mxu1 (!%p253_p3), %vm978_vm0, %v977_v1  ;;  %v928_v10 = vld [vmem:[%s1173_s3 + $0x18] sm:$0xff] (!%p253_p3)   ;;  %v922_v11 = vld [vmem:[%s1171_s1 + $0x30] sm:$0xff] (!%p253_p3)   ;;  %v929_v14 = vld [vmem:[%s1173_s3 + $0x20] sm:$0xff] (!%p253_p3)  }
   0xa   : > { %851 = vmatpush3.bf16.msra.mxu1 (!%p253_p3), %v925_v4  ;;  %v923_v12 = vld [vmem:[%s1171_s1 + $0x38] sm:$0xff] (!%p253_p3)   ;;  %v930_v15 = vld [vmem:[%s1173_s3 + $0x28] sm:$0xff] (!%p253_p3)   ;;  %v931_v16 = vld [vmem:[%s1173_s3 + $0x30] sm:$0xff] (!%p253_p3)  }
   0xb   : > { %852 = vmatprep.subr.bf16.mxu1 (!%p253_p3), %v977_v1  ;;  %v932_v17 = vld [vmem:[%s1173_s3 + $0x38] sm:$0xff] (!%p253_p3)   ;;  %v933_v18 = vld [vmem:[%s1175_s5] sm:$0xff] (!%p253_p3)   ;;  %v934_v19 = vld [vmem:[%s1175_s5 + $0x8] sm:$0xff] (!%p253_p3)  }
   0xc   : > { %833 = vmatpush3.bf16.msra.mxu0 (!%p253_p3), %v917_v2  ;;  %v935_v20 = vld [vmem:[%s1175_s5 + $0x10] sm:$0xff] (!%p253_p3)   ;;  %v936_v21 = vld [vmem:[%s1175_s5 + $0x18] sm:$0xff] (!%p253_p3)   ;;  %v764_v22 = vld [vmem:[%s1172_s2] ss:$0 sm:$0xff] (!%p253_p3) }
   0xd   : > { %834 = vmatprep.subr.bf16.mxu0 (!%p253_p3), %v977_v1  ;;  %v937_v32 = vld [vmem:[%s1175_s5 + $0x20] sm:$0xff] (!%p253_p3)   ;;  %v938_v33 = vld [vmem:[%s1175_s5 + $0x28] sm:$0xff] (!%p253_p3)   ;;  %v939_v34 = vld [vmem:[%s1175_s5 + $0x30] sm:$0xff] (!%p253_p3)  }
   0xe   : > { %s1183_s9 = smov (!%p288_p4, %s760_s9), 3  ;;  %853 = vmatpush3.bf16.msra.mxu1 %v926_v6  ;;  %v940_v35 = vld [vmem:[%s1175_s5 + $0x38] sm:$0xff]   ;;  %v774_v36 = vld [vmem:[%s1174_s4] ss:$0 sm:$0xff] }
   0xf   : > { %s761_s12 = sshll.u32 %s1183_s9, 2  ;;  %854 = vmatprep.subr.bf16.mxu1 %v977_v1  ;;  %v783_v46 = vld [vmem:[%s1176_s6] ss:$0 sm:$0xff] }
  0x10   : > { %s291_s15 = scalar_lea.vmem %s1170_s0, %s761_s12  ;;  %835 = vmatpush3.bf16.msra.mxu0 %v918_v3  ;;  %s300_s11 = scalar_lea.vmem %s1177_s7, %s761_s12 }
  0x11   : > { %836 = vmatprep.subr.bf16.mxu0 %v977_v1  ;;  %v924_v13 = vld [vmem:[%s291_s15] sm:$0xff]  }
  0x12   : > { %855 = vmatpush3.bf16.msra.mxu1 %v927_v8 }
  0x13   : > { %856 = vmatprep.subr.bf16.mxu1 %v977_v1 }
  0x14   : > { %837 = vmatpush3.bf16.msra.mxu0 %v919_v5 }
  0x15   : > { %838 = vmatprep.subr.bf16.mxu0 %v977_v1 }
  0x16   : > { %857 = vmatpush3.bf16.msra.mxu1 %v928_v10 }
  0x17   : > { %858 = vmatprep.subr.bf16.mxu1 %v977_v1 }
  0x18   : > { %839 = vmatpush3.bf16.msra.mxu0 %v920_v7 }
  0x19   : > { %840 = vmatprep.subr.bf16.mxu0 %v977_v1 }
  0x1a   : > { %859 = vmatpush3.bf16.msra.mxu1 %v929_v14 }
  0x1b   : > { %860 = vmatprep.subr.bf16.mxu1 %v977_v1 }
  0x1c   : > { %841 = vmatpush3.bf16.msra.mxu0 %v921_v9 }
  0x1d   : > { %842 = vmatprep.subr.bf16.mxu0 %v977_v1 }
  0x1e   : > { %861 = vmatpush3.bf16.msra.mxu1 %v930_v15 }
  0x1f   : > { %862 = vmatprep.subr.bf16.mxu1 %v977_v1 }
  0x20   : > { %843 = vmatpush3.bf16.msra.mxu0 %v922_v11 }
  0x21   : > { %844 = vmatprep.subr.bf16.mxu0 %v977_v1 }
  0x22   : > { %863 = vmatpush3.bf16.msra.mxu1 %v931_v16 }
  0x23   : > { %864 = vmatprep.subr.bf16.mxu1 %v977_v1 }
  0x24   : > { %845 = vmatpush3.bf16.msra.mxu0 %v923_v12 }
  0x25   : > { %870 = vmatprep.subr.bf16.mxu0 %v977_v1 }
  0x26   : > { %865 = vmatpush3.bf16.msra.mxu1 %v932_v17 }
  0x27   : > { %847 = vmatmul.mubr.bf16.vlgmr.msra.gmra.mrb[0].mxu0 %v924_v13 }
  0x28   : > { %886 = vmatprep.mubr.msk.bf16.mxu0 %vm978_vm0, %v977_v1  ;;  %871 = vmatpush3.bf16.msra.mxu0 %v933_v18 }
  0x29   : > { %872 = vmatprep.subr.bf16.mxu0 %v977_v1 }
  0x2c   : > { %873 = vmatpush3.bf16.msra.mxu0 %v934_v19 }
  0x2d   : > { %874 = vmatprep.subr.bf16.mxu0 %v977_v1 }
  0x30   : > { %875 = vmatpush3.bf16.msra.mxu0 %v935_v20 }
  0x31   : > { %876 = vmatprep.subr.bf16.mxu0 %v977_v1 }
  0x34   : > { %877 = vmatpush3.bf16.msra.mxu0 %v936_v21 }
  0x35   : > { %878 = vmatprep.subr.bf16.mxu0 %v977_v1 }
  0x38   : > { %879 = vmatpush3.bf16.msra.mxu0 %v937_v32 }
  0x39   : > { %880 = vmatprep.subr.bf16.mxu0 %v977_v1 }
  0x3c   : > { %881 = vmatpush3.bf16.msra.mxu0 %v938_v33 }
  0x3d   : > { %882 = vmatprep.subr.bf16.mxu0 %v977_v1 }
  0x40   : > { %883 = vmatpush3.bf16.msra.mxu0 %v939_v34 }
  0x41   : > { %884 = vmatprep.subr.bf16.mxu0 %v977_v1 }
  0x44   : > { %885 = vmatpush3.bf16.msra.mxu0 %v940_v35 }
  0xfa   : > { %v420_v23 = vpop.f32.mrb[0].mxu0 }
  0xfb   : > { %v421_v24 = vadd.f32 %v764_v22, %v420_v23  ;;  %v848_v25 = vpop.f32.mrb[1].mxu0 }
  0xfc   : > { %v423_v26 = vpop.f32.mrb[2].mxu0 }
  0xfd   : > { %v424_v27 = vadd.f32 %v764_v22, %v423_v26  ;;  %v849_v28 = vpop.f32.mrb[3].mxu0  ;;  %941 = vtanh.f32 %v421_v24 }
  0xff   : > { %943 = vtanh.f32 %v424_v27 }
 0x107   : > { %v942_v29 = vpop.eup %941 }
 0x109   : > { %v944_v30 = vpop.eup %943 }
 0x10a   : > { %v429_v31 = vpack.c.bf16 %v944_v30, %v942_v29 }
 0x10c   : > { %867 = vmatmul.mubr.bf16.vlgmr.msra.gmra.mrb[0].mxu1 %v429_v31 }
 0x1df   : > { %v535_v37 = vpop.f32.mrb[0].mxu1 }
 0x1e0   : > { %v536_v38 = vadd.f32 %v774_v36, %v535_v37  ;;  %v868_v39 = vpop.f32.mrb[1].mxu1 }
 0x1e1   : > { %v538_v40 = vpop.f32.mrb[2].mxu1 }
 0x1e2   : > { %v539_v41 = vadd.f32 %v774_v36, %v538_v40  ;;  %v869_v42 = vpop.f32.mrb[3].mxu1  ;;  %945 = vtanh.f32 %v536_v38 }
 0x1e4   : > { %947 = vtanh.f32 %v539_v41 }
 0x1ec   : > { %v946_v43 = vpop.eup %945 }
 0x1ee   : > { %v948_v44 = vpop.eup %947 }
 0x1ef   : > { %v544_v45 = vpack.c.bf16 %v948_v44, %v946_v43 }
 0x1f1   : > { %887 = vmatmul.mubr.bf16.vlgmr.msra.gmra.mrb[4].mxu0 %v544_v45 }
 0x2c4   : > { %v658_v47 = vpop.f32.mrb[4].mxu0 }
 0x2c5   : > { %v659_v48 = vadd.f32 %v783_v46, %v658_v47  ;;  %v888_v49 = vpop.f32.mrb[5].mxu0 }
 0x2c6   : > { %v661_v50 = vpop.f32.mrb[6].mxu0 }
 0x2c7   : > { %v662_v51 = vadd.f32 %v783_v46, %v661_v50  ;;  %v889_v52 = vpop.f32.mrb[7].mxu0  ;;  %949 = vtanh.f32 %v659_v48 }
 0x2c9   : > { %951 = vtanh.f32 %v662_v51 }
 0x2d1   : > { %v950_v53 = vpop.eup %949 }
 0x2d3   : > { %v952_v54 = vpop.eup %951 }
 0x2d4   : > { %v801_v55 = vpack.c.bf16 %v952_v54, %v950_v53 }
 0x2d6   : > { %802 = vst [vmem:[%s300_s11] sm:$0xff] %v801_v55  }
 0x2d7 PF: > { %s17_s26 = sadd.s32 1, %s975_s26   ;;  %s1178_s24 = smov %s971_s25 }
 0x2d8   : > { %p14_p5 = scmp.ge.s32.totalorder %s17_s26, 4   ;;  %s1179_s25 = smov %s1181_s27 }
 0x2da   :  { %16 = sbr.rel (!%p14_p5) target bundleno = 2 (0x2), region = 84 }

</bundles_post_ra>
